<compile_context>
chip_gen: v6e
topology: v6e:2x2x1
jax: 0.10.0
libtpu: 0.0.40
codegen_flags: <defaults>
</compile_context>

<pallas_src>
import numpy as np
import jax
import jax.numpy as jnp
from jax import lax
from jax.experimental import pallas as pl
from jax.experimental.pallas import tpu as pltpu


LANE_TILE = 512       # lane (last-dim) width per block; multiple of 128
MAX_ROW_TILE = 1024   # max sublane rows per block (<= ~4.5 MiB of output/block)
ROW_ALIGN = 32        # int8 native sublane tiling -> rows a multiple of 32


def _round_up(x, m):
    return ((x + m - 1) // m) * m


def _make_mapper_kernel(points_np, n_bits):
    """Build a kernel closure with the constellation baked in as constants."""
    n_bits = int(n_bits)
    M = 1 << n_bits
    re_all = [float(v) for v in np.real(points_np)]
    im_all = [float(v) for v in np.imag(points_np)]

    # Separability check: for square-QAM-like constellations the real part
    # depends only on the first NB/2 (MSB) bits and the imaginary part only on
    # the remaining bits -> per-rail select trees of depth NB/2.
    h_bits = n_bits // 2
    l_bits = n_bits - h_bits
    separable = False
    re_table = im_table = None
    if h_bits >= 1 and l_bits >= 1:
        re_grid = np.real(points_np).reshape(1 << h_bits, 1 << l_bits)
        im_grid = np.imag(points_np).reshape(1 << h_bits, 1 << l_bits)
        if (np.array_equal(re_grid, np.broadcast_to(re_grid[:, :1], re_grid.shape))
                and np.array_equal(im_grid, np.broadcast_to(im_grid[:1, :], im_grid.shape))):
            separable = True
            re_table = [float(v) for v in re_grid[:, 0]]
            im_table = [float(v) for v in im_grid[0, :]]

    def _select_tree(leaves, masks):
        # leaves: python-float constellation values indexed by the bits in
        # `masks` (MSB first).  Merge pairwise starting with the LSB mask; the
        # constants fold directly into the vector selects.
        vals = list(leaves)
        for mask in reversed(masks):
            nxt = []
            for i in range(0, len(vals), 2):
                lo, hi = vals[i], vals[i + 1]
                if isinstance(lo, float) and isinstance(hi, float) and lo == hi:
                    nxt.append(lo)                       # constant-fold
                else:
                    nxt.append(jnp.where(mask, hi, lo))
            vals = nxt
        return vals[0]

    def _blockify(v, shape):
        if isinstance(v, float):
            return jnp.full(shape, v, jnp.float32)
        return v.astype(jnp.float32)

    def kernel(idx_ref, out_ref):
        # idx_ref: (TR, TC) int8/int32 packed symbol indices (lane-dense)
        # out_ref: (2, TR, TC) float32; plane 0 = re, plane 1 = im
        idx = idx_ref[...].astype(jnp.int32)
        masks = [(idx & (1 << (n_bits - 1 - k))) != 0 for k in range(n_bits)]
        if separable:
            re = _select_tree(re_table, masks[:h_bits])
            im = _select_tree(im_table, masks[h_bits:])
        else:
            # Rails processed sequentially to bound live block temporaries.
            # TODO(synk): for non-separable constellations with M >= 64, chunk
            # the select tree (process the table in slices) to cap vreg/VMEM
            # temporaries instead of holding M/2 block-sized values at once.
            re = _select_tree(re_all, masks)
            im = _select_tree(im_all, masks)
        out_ref[0, :, :] = _blockify(re, idx.shape)
        out_ref[1, :, :] = _blockify(im, idx.shape)

    if separable:
        per_elem_ops = 2 * n_bits + ((1 << h_bits) - 1) + ((1 << l_bits) - 1)
    else:
        per_elem_ops = 2 * n_bits + 2 * (M - 1)
    return kernel, per_elem_ops


def mapper_forward(inputs, points, n_bits_per_sym):
    """inputs: (..., n) binary entries -> (..., n // n_bits_per_sym) complex64."""
    *lead, n = inputs.shape
    nb = int(n_bits_per_sym)
    assert n % nb == 0, "last input dim must be a multiple of n_bits_per_sym"
    s_per_row = n // nb

    points_np = np.asarray(points)            # small static constellation table
    M = 1 << nb
    assert points_np.shape[0] == M, "constellation must have 2**n_bits_per_sym points"

    # --- pack bits -> one symbol index per symbol (single fused XLA pass).
    # Matches the reference: inputs.to(int32), then weighted sum with 2^(nb-1-k).
    bits = jnp.reshape(inputs, (-1, nb)).astype(jnp.int32)       # (N_sym, nb)
    base = jnp.asarray([1 << (nb - 1 - k) for k in range(nb)], jnp.int32)
    idx = jnp.sum(bits * base, axis=-1)                          # (N_sym,) int32
    idx_dtype = jnp.int8 if nb <= 7 else jnp.int32
    idx = idx.astype(idx_dtype)
    n_sym = idx.shape[0]

    # --- lane-dense tiling of the symbol stream: (r_pad, 512).
    tc = LANE_TILE
    r_total = max(1, pl.cdiv(n_sym, tc))
    if r_total <= ROW_ALIGN:
        tr = ROW_ALIGN                        # tiny input: one small block
        r_pad = tr
    else:
        # Force >= 2 grid steps so the DMA double-buffer overlaps and v7x's two
        # TensorCores both get work; cap rows at MAX_ROW_TILE.
        tr = min(MAX_ROW_TILE, _round_up(pl.cdiv(r_total, 2), ROW_ALIGN))
        r_pad = _round_up(r_total, tr)
    n_pad = r_pad * tc

    # Pad maps to index 0 (points[0]); padded symbols are sliced off below.
    idx_grid = jnp.pad(idx, (0, n_pad - n_sym)).reshape(r_pad, tc)

    kernel, per_elem_ops = _make_mapper_kernel(points_np, nb)
    in_bytes = n_pad * jnp.dtype(idx_dtype).itemsize
    out_bytes = 2 * n_pad * 4

    out = pl.pallas_call(
        kernel,
        out_shape=jax.ShapeDtypeStruct((2, r_pad, tc), jnp.float32),
        grid=(r_pad // tr,),
        in_specs=[pl.BlockSpec((tr, tc), lambda r: (r, 0))],
        out_specs=pl.BlockSpec((2, tr, tc), lambda r: (0, r, 0)),
        compiler_params=pltpu.CompilerParams(
            dimension_semantics=("parallel",),
            vmem_limit_bytes=48 * 1024 * 1024,
        ),
        cost_estimate=pl.CostEstimate(
            flops=n_pad * per_elem_ops,
            transcendentals=0,
            bytes_accessed=in_bytes + out_bytes,
        ),
    )(idx_grid)

    # Complex view (the module returns complex64).  Consumers that can take
    # planar re/im would use `out` directly and skip this extra pass.
    flat = out.reshape(2, -1)
    x = lax.complex(flat[0, :n_sym], flat[1, :n_sym])
    return jnp.reshape(x, (*lead, s_per_row))


def make_qam16_constellation():
    """Deterministic Gray-ish 16-QAM constellation (complex64), n_bits_per_sym=4."""
    n_bits = 4
    M = 2 ** n_bits
    lvl = np.array([-3.0, -1.0, 1.0, 3.0], dtype=np.float32) / np.sqrt(10.0)
    pts = np.zeros(M, dtype=np.complex64)
    for idx in range(M):
        b = [(idx >> (n_bits - 1 - k)) & 1 for k in range(n_bits)]  # MSB first
        re = lvl[2 * b[0] + b[1]]
        im = lvl[2 * b[2] + b[3]]
        pts[idx] = re + 1j * im
    return pts, n_bits


if __name__ == "__main__":
    points_np, n_bits = make_qam16_constellation()

    # small input: batch=2, n=32 bits -> 8 symbols per row (16-QAM)
    key = jax.random.PRNGKey(0)
    batch, n = 2, 32
    x_bits = jax.random.bernoulli(key, 0.5, (batch, n)).astype(jnp.float32)

    out = mapper_forward(x_bits, points_np, n_bits)
    out = jax.block_until_ready(out)

    # pure numpy reference check (same semantics as the PyTorch module)
    bits_i = np.asarray(x_bits).astype(np.int32).reshape(batch, n // n_bits, n_bits)
    base_np = 2 ** np.arange(n_bits - 1, -1, -1)
    idx = np.sum(bits_i * base_np, axis=-1)
    ref = points_np[idx]
    np.testing.assert_allclose(np.asarray(out), ref, rtol=1e-6, atol=1e-6)
    assert out.shape == (batch, n // n_bits) and out.dtype == jnp.complex64

    print("KERNEL_OK")
</pallas_src>

<mosaic_0001>
module attributes {stable_mosaic.version = 11 : i64} {
  func.func @kernel(%arg0: i32, %arg1: memref<32x512xi8, #tpu.memory_space<vmem>>, %arg2: memref<2x32x512xf32, #tpu.memory_space<vmem>>) attributes {dimension_semantics = [#tpu.dimension_semantics<parallel>], iteration_bounds = array<i64: 1>, scalar_prefetch = 0 : i64, scratch_operands = 0 : i64, tpu.core_type = #tpu.core_type<tc>, window_params = [{transform_indices = @transform_0, window_bounds = array<i64: 32, 512>}, {transform_indices = @transform_1, window_bounds = array<i64: 2, 32, 512>}]} {
    %c0 = arith.constant 0 : index
    %c0_0 = arith.constant 0 : index
    %0 = vector.load %arg1[%c0, %c0_0] : memref<32x512xi8, #tpu.memory_space<vmem>>, vector<32x512xi8>
    %1 = arith.extsi %0 : vector<32x512xi8> to vector<32x512xi32>
    %c8_i32 = arith.constant 8 : i32
    %2 = vector.broadcast %c8_i32 : i32 to vector<32x512xi32>
    %3 = arith.andi %1, %2 : vector<32x512xi32>
    %c0_i32 = arith.constant 0 : i32
    %4 = vector.broadcast %c0_i32 : i32 to vector<32x512xi32>
    %5 = arith.cmpi ne, %3, %4 : vector<32x512xi32>
    %c4_i32 = arith.constant 4 : i32
    %6 = vector.broadcast %c4_i32 : i32 to vector<32x512xi32>
    %7 = arith.andi %1, %6 : vector<32x512xi32>
    %c0_i32_1 = arith.constant 0 : i32
    %8 = vector.broadcast %c0_i32_1 : i32 to vector<32x512xi32>
    %9 = arith.cmpi ne, %7, %8 : vector<32x512xi32>
    %c2_i32 = arith.constant 2 : i32
    %10 = vector.broadcast %c2_i32 : i32 to vector<32x512xi32>
    %11 = arith.andi %1, %10 : vector<32x512xi32>
    %c0_i32_2 = arith.constant 0 : i32
    %12 = vector.broadcast %c0_i32_2 : i32 to vector<32x512xi32>
    %13 = arith.cmpi ne, %11, %12 : vector<32x512xi32>
    %c1_i32 = arith.constant 1 : i32
    %14 = vector.broadcast %c1_i32 : i32 to vector<32x512xi32>
    %15 = arith.andi %1, %14 : vector<32x512xi32>
    %c0_i32_3 = arith.constant 0 : i32
    %16 = vector.broadcast %c0_i32_3 : i32 to vector<32x512xi32>
    %17 = arith.cmpi ne, %15, %16 : vector<32x512xi32>
    %cst = arith.constant -0.316227764 : f32
    %cst_4 = arith.constant -0.948683321 : f32
    %18 = vector.broadcast %cst : f32 to vector<32x512xf32>
    %19 = vector.broadcast %cst_4 : f32 to vector<32x512xf32>
    %20 = arith.select %9, %18, %19 : vector<32x512xi1>, vector<32x512xf32>
    %cst_5 = arith.constant 0.948683321 : f32
    %cst_6 = arith.constant 0.316227764 : f32
    %21 = vector.broadcast %cst_5 : f32 to vector<32x512xf32>
    %22 = vector.broadcast %cst_6 : f32 to vector<32x512xf32>
    %23 = arith.select %9, %21, %22 : vector<32x512xi1>, vector<32x512xf32>
    %24 = arith.select %5, %23, %20 : vector<32x512xi1>, vector<32x512xf32>
    %cst_7 = arith.constant -0.316227764 : f32
    %cst_8 = arith.constant -0.948683321 : f32
    %25 = vector.broadcast %cst_7 : f32 to vector<32x512xf32>
    %26 = vector.broadcast %cst_8 : f32 to vector<32x512xf32>
    %27 = arith.select %17, %25, %26 : vector<32x512xi1>, vector<32x512xf32>
    %cst_9 = arith.constant 0.948683321 : f32
    %cst_10 = arith.constant 0.316227764 : f32
    %28 = vector.broadcast %cst_9 : f32 to vector<32x512xf32>
    %29 = vector.broadcast %cst_10 : f32 to vector<32x512xf32>
    %30 = arith.select %17, %28, %29 : vector<32x512xi1>, vector<32x512xf32>
    %31 = arith.select %13, %30, %27 : vector<32x512xi1>, vector<32x512xf32>
    %c0_11 = arith.constant 0 : index
    %c0_12 = arith.constant 0 : index
    %c0_13 = arith.constant 0 : index
    %32 = vector.load %arg2[%c0_11, %c0_12, %c0_13] : memref<2x32x512xf32, #tpu.memory_space<vmem>>, vector<1x32x512xf32>
    %33 = vector.shape_cast %32 : vector<1x32x512xf32> to vector<32x512xf32>
    %34 = vector.shape_cast %24 : vector<32x512xf32> to vector<1x32x512xf32>
    tpu.vector_store %arg2[%c0_11, %c0_12, %c0_13], %34 {strides = array<i32>} : memref<2x32x512xf32, #tpu.memory_space<vmem>>, vector<1x32x512xf32>,
    %c1 = arith.constant 1 : index
    %c0_14 = arith.constant 0 : index
    %c0_15 = arith.constant 0 : index
    %35 = vector.load %arg2[%c1, %c0_14, %c0_15] : memref<2x32x512xf32, #tpu.memory_space<vmem>>, vector<1x32x512xf32>
    %36 = vector.shape_cast %35 : vector<1x32x512xf32> to vector<32x512xf32>
    %37 = vector.shape_cast %31 : vector<32x512xf32> to vector<1x32x512xf32>
    tpu.vector_store %arg2[%c1, %c0_14, %c0_15], %37 {strides = array<i32>} : memref<2x32x512xf32, #tpu.memory_space<vmem>>, vector<1x32x512xf32>,
    return
  }
  func.func @transform_0(%arg0: i32) -> (i32, i32) {
    %c0_i32 = arith.constant 0 : i32
    %c0_i32_0 = arith.constant 0 : i32
    return %arg0, %c0_i32 : i32, i32
  }
  func.func @transform_1(%arg0: i32) -> (i32, i32, i32) {
    %c0_i32 = arith.constant 0 : i32
    %c0_i32_0 = arith.constant 0 : i32
    %c0_i32_1 = arith.constant 0 : i32
    return %c0_i32, %arg0, %c0_i32_0 : i32, i32, i32
  }
}

</mosaic_0001>

<bundles_post_ra>
// kernel: tpu_custom_call.1
= control target key start
LH: loop header
LB: loop body
LE: loop exit
PB: predicated region body
PF: predicated region fallthrough
CT: control target
= control target key end

     0   :  { %6 = vsyncpa [#allocation3], 0  ;;  %s631_s0 = inlined_call_operand.hbm [shape: s8[32,512], index: 0, kind: input, shape index: {}]   ;;  %s632_s1 = inlined_call_operand.hbm [shape: f32[2,32,512], index: 1, kind: output, shape index: {}]  }
   0x1   :  { %7 = vsyncpa [#allocation4], 0  ;;  %s365_s6 = smov [#allocation2]  }
   0x2   :  { %s14_s7 = sshll.u32 %s365_s6, 4  ;;  %s15_s7 = int_to_ptr.vmem [resolvable:$true] %s14_s7 }
   0x3   :  { %s329_s8 = scalar_lea.vmem %s15_s7, 512  ;;  %p334_p1 = scmp.lt.s32.totalorder %s15_s7, %s15_s7 }
   0x4   :  { %p330_p0 = scmp.ne.s32.totalorder %s15_s7, %s329_s8  ;;  %p335_p2 = scmp.lt.s32.totalorder %s329_s8, %s329_s8 }
   0x6   :  { %p336_p3 = por %p335_p2, %p334_p1 }
   0x8   :  { %p337_p4 = pnand %p336_p3, %p330_p0 }
   0xa   :  { %340 = shalt.err (!%p337_p4)
}
   0xb   :  { %17 = dma.hbm_to_vmem [thread:$0]  %s631_s0, 512, %s15_s7, [#allocation3]  }
   0xc   :  { %361 = dma.done.wait [#allocation3], 512  }
   0xd   :  { %362 = vsyncadd [#allocation3], 4294966784  ;;  %v384_v0 = vld [vmem:[#allocation2] sm:$0xff]  ;;  %v386_v1 = vld [vmem:[#allocation2 + $0x8] sm:$0xff]  ;;  %v366_v21 = vmov -0.9486833  }
   0xe   :  { %v388_v2 = vld [vmem:[#allocation2 + $0x10] sm:$0xff]  ;;  %v391_v3 = vunpack.c.0.s8 %v384_v0  ;;  %v394_v4 = vunpack.c.0.s8 %v386_v1  ;;  %v399_v6 = vld [vmem:[#allocation2 + $0x18] sm:$0xff]  ;;  %v402_v7 = vunpack.c.1.s8 %v384_v0  ;;  %v408_v9 = vunpack.c.1.s8 %v386_v1  ;;  %s368_s0 = smov [#allocation5]  }
   0xf   :  { %v397_v5 = vunpack.c.0.s8 %v388_v2  ;;  %v405_v8 = vunpack.c.0.s8 %v399_v6  ;;  %v411_v10 = vunpack.c.1.s8 %v388_v2  ;;  %v414_v11 = vunpack.c.1.s8 %v399_v6  ;;  %s303_s11 = sshll.u32 %s368_s0, 4  ;;  %s304_s11 = int_to_ptr.vmem [resolvable:$true] %s303_s11 }
  0x10   :  { %v41_v12 = vand.u32 8, %v391_v3  ;;  %v73_v13 = vand.u32 4, %v391_v3  ;;  %v42_v14 = vand.u32 8, %v394_v4  ;;  %v74_v15 = vand.u32 4, %v394_v4  ;;  %s341_s12 = scalar_lea.vmem %s304_s11, 4096  ;;  %p346_p6 = scmp.lt.s32.totalorder %s304_s11, %s304_s11 }
  0x11   :  { %v43_v16 = vand.u32 8, %v397_v5  ;;  %v75_v17 = vand.u32 4, %v397_v5  ;;  %v44_v18 = vand.u32 8, %v405_v8  ;;  %v76_v19 = vand.u32 4, %v405_v8  ;;  %p342_p5 = scmp.ne.s32.totalorder %s304_s11, %s341_s12  ;;  %p347_p7 = scmp.lt.s32.totalorder %s341_s12, %s341_s12 }
  0x12   :  { %vm57_vm0 = vcmp.ne.s32.totalorder %v41_v12, 0  ;;  %vm89_vm1 = vcmp.ne.s32.totalorder %v73_v13, 0  ;;  %vm424_vm2 = vcmp.ne.s32.totalorder %v42_v14, 0  ;;  %vm90_vm3 = vcmp.ne.s32.totalorder %v74_v15, 0 }
  0x13   :  { %v169_v22 = vsel %vm89_vm1, -0.31622776, %v366_v21  ;;  %v367_v23 = vmov 0.31622776   ;;  %v170_v25 = vsel %vm90_vm3, -0.31622776, %v366_v21  ;;  %v432_v26 = vunpack.c.2.s8 %v384_v0  ;;  %p348_p8 = por %p347_p7, %p346_p6 }
  0x14   :  { %v185_v24 = vsel %vm89_vm1, 0.9486833, %v367_v23  ;;  %v186_v28 = vsel %vm90_vm3, 0.9486833, %v367_v23  ;;  %vm59_vm4 = vcmp.ne.s32.totalorder %v43_v16, 0  ;;  %vm91_vm5 = vcmp.ne.s32.totalorder %v75_v17, 0 }
  0x15   :  { %v201_v27 = vsel %vm57_vm0, %v185_v24, %v169_v22  ;;  %v202_v29 = vsel %vm424_vm2, %v186_v28, %v170_v25  ;;  %v171_v30 = vsel %vm91_vm5, -0.31622776, %v366_v21  ;;  %v187_v31 = vsel %vm91_vm5, 0.9486833, %v367_v23  ;;  %p349_p9 = pnand %p348_p8, %p342_p5 }
  0x16   :  { %265 = vst [vmem:[#allocation5] sm:$0xff] %v201_v27  ;;  %vm60_vm6 = vcmp.ne.s32.totalorder %v44_v18, 0  ;;  %266 = vst [vmem:[#allocation5 + $0x8] sm:$0xff] %v202_v29  ;;  %v203_v32 = vsel %vm59_vm4, %v187_v31, %v171_v30  ;;  %vm92_vm7 = vcmp.ne.s32.totalorder %v76_v19, 0  ;;  %v45_v33 = vand.u32 8, %v402_v7 }
  0x17   :  { %v77_v34 = vand.u32 4, %v402_v7  ;;  %267 = vst [vmem:[#allocation5 + $0x10] sm:$0xff] %v203_v32  ;;  %v172_v35 = vsel %vm92_vm7, -0.31622776, %v366_v21  ;;  %v188_v36 = vsel %vm92_vm7, 0.9486833, %v367_v23  ;;  %v460_v53 = vunpack.c.2.s8 %v386_v1 }
  0x18   :  { %v46_v37 = vand.u32 8, %v408_v9  ;;  %v78_v38 = vand.u32 4, %v408_v9  ;;  %v204_v39 = vsel %vm60_vm6, %v188_v36, %v172_v35  ;;  %vm61_vm8 = vcmp.ne.s32.totalorder %v45_v33, 0 }
  0x19   :  { %vm93_vm9 = vcmp.ne.s32.totalorder %v77_v34, 0  ;;  %v47_v40 = vand.u32 8, %v411_v10  ;;  %268 = vst [vmem:[#allocation5 + $0x18] sm:$0xff] %v204_v39  ;;  %v79_v48 = vand.u32 4, %v411_v10  ;;  %v48_v49 = vand.u32 8, %v414_v11 }
  0x1a   :  { %v173_v41 = vsel %vm93_vm9, -0.31622776, %v366_v21  ;;  %v189_v42 = vsel %vm93_vm9, 0.9486833, %v367_v23  ;;  %vm62_vm10 = vcmp.ne.s32.totalorder %v46_v37, 0  ;;  %vm94_vm11 = vcmp.ne.s32.totalorder %v78_v38, 0 }
  0x1b   :  { %v205_v43 = vsel %vm61_vm8, %v189_v42, %v173_v41  ;;  %v174_v44 = vsel %vm94_vm11, -0.31622776, %v366_v21  ;;  %v190_v45 = vsel %vm94_vm11, 0.9486833, %v367_v23  ;;  %vm450_vm12 = vcmp.ne.s32.totalorder %v47_v40, 0 }
  0x1c   :  { %269 = vst [vmem:[#allocation5 + $0x20] sm:$0xff] %v205_v43  ;;  %v206_v47 = vsel %vm62_vm10, %v190_v45, %v174_v44  ;;  %v80_v50 = vand.u32 4, %v414_v11  ;;  %v49_v51 = vand.u32 8, %v432_v26  ;;  %v81_v52 = vand.u32 4, %v432_v26 }
  0x1d   :  { %270 = vst [vmem:[#allocation5 + $0x28] sm:$0xff] %v206_v47  ;;  %v463_v54 = vunpack.c.2.s8 %v388_v2  ;;  %vm95_vm13 = vcmp.ne.s32.totalorder %v79_v48, 0  ;;  %vm465_vm14 = vcmp.ne.s32.totalorder %v48_v49, 0  ;;  %v470_v56 = vunpack.c.2.s8 %v399_v6 }
  0x1e   :  { %vm96_vm15 = vcmp.ne.s32.totalorder %v80_v50, 0  ;;  %v175_v57 = vsel %vm95_vm13, -0.31622776, %v366_v21  ;;  %v191_v58 = vsel %vm95_vm13, 0.9486833, %v367_v23  ;;  %v476_v60 = vunpack.c.3.s8 %v384_v0 }
  0x1f   :  { %v176_v59 = vsel %vm96_vm15, -0.31622776, %v366_v21  ;;  %v207_v61 = vsel %vm450_vm12, %v191_v58, %v175_v57  ;;  %v192_v62 = vsel %vm96_vm15, 0.9486833, %v367_v23  ;;  %vm65_vm0 = vcmp.ne.s32.totalorder %v49_v51, 0 }
  0x20   :  { %vm97_vm1 = vcmp.ne.s32.totalorder %v81_v52, 0  ;;  %271 = vst [vmem:[#allocation5 + $0x30] sm:$0xff] %v207_v61  ;;  %v208_v63 = vsel %vm465_vm14, %v192_v62, %v176_v59  ;;  %v50_v14 = vand.u32 8, %v460_v53  ;;  %v82_v15 = vand.u32 4, %v460_v53 }
  0x21   :  { %v177_v12 = vsel %vm97_vm1, -0.31622776, %v366_v21  ;;  %v193_v13 = vsel %vm97_vm1, 0.9486833, %v367_v23  ;;  %272 = vst [vmem:[#allocation5 + $0x38] sm:$0xff] %v208_v63  ;;  %v51_v16 = vand.u32 8, %v463_v54  ;;  %v505_v30 = vunpack.c.3.s8 %v386_v1 }
  0x22   :  { %v209_v0 = vsel %vm65_vm0, %v193_v13, %v177_v12  ;;  %v83_v17 = vand.u32 4, %v463_v54  ;;  %vm489_vm2 = vcmp.ne.s32.totalorder %v50_v14, 0  ;;  %v52_v19 = vand.u32 8, %v470_v56 }
  0x23   :  { %273 = vst [vmem:[#allocation5 + $0x40] sm:$0xff] %v209_v0  ;;  %v84_v20 = vand.u32 4, %v470_v56  ;;  %v53_v22 = vand.u32 8, %v476_v60  ;;  %vm98_vm3 = vcmp.ne.s32.totalorder %v82_v15, 0  ;;  %vm496_vm4 = vcmp.ne.s32.totalorder %v51_v16, 0 }
  0x24   :  { %vm99_vm5 = vcmp.ne.s32.totalorder %v83_v17, 0  ;;  %v85_v25 = vand.u32 4, %v476_v60  ;;  %v178_v27 = vsel %vm98_vm3, -0.31622776, %v366_v21  ;;  %v194_v28 = vsel %vm98_vm3, 0.9486833, %v367_v23 }
  0x25   :  { %v179_v29 = vsel %vm99_vm5, -0.31622776, %v366_v21  ;;  %v210_v31 = vsel %vm489_vm2, %v194_v28, %v178_v27  ;;  %v195_v32 = vsel %vm99_vm5, 0.9486833, %v367_v23  ;;  %vm68_vm6 = vcmp.ne.s32.totalorder %v52_v19, 0 }
  0x26   :  { %vm100_vm7 = vcmp.ne.s32.totalorder %v84_v20, 0  ;;  %274 = vst [vmem:[#allocation5 + $0x48] sm:$0xff] %v210_v31  ;;  %v211_v33 = vsel %vm496_vm4, %v195_v32, %v179_v29  ;;  %vm69_vm8 = vcmp.ne.s32.totalorder %v53_v22, 0  ;;  %vm101_vm9 = vcmp.ne.s32.totalorder %v85_v25, 0 }
  0x27   :  { %v180_v34 = vsel %vm100_vm7, -0.31622776, %v366_v21  ;;  %v196_v35 = vsel %vm100_vm7, 0.9486833, %v367_v23  ;;  %275 = vst [vmem:[#allocation5 + $0x50] sm:$0xff] %v211_v33  ;;  %v54_v1 = vand.u32 8, %v505_v30  ;;  %v519_v40 = vunpack.c.3.s8 %v388_v2 }
  0x28   :  { %v212_v36 = vsel %vm68_vm6, %v196_v35, %v180_v34  ;;  %v86_v37 = vand.u32 4, %v505_v30  ;;  %v181_v38 = vsel %vm101_vm9, -0.31622776, %v366_v21  ;;  %v197_v39 = vsel %vm101_vm9, 0.9486833, %v367_v23 }
  0x29   :  { %276 = vst [vmem:[#allocation5 + $0x58] sm:$0xff] %v212_v36  ;;  %v522_v41 = vunpack.c.3.s8 %v399_v6  ;;  %v213_v42 = vsel %vm69_vm8, %v197_v39, %v181_v38  ;;  %vm70_vm10 = vcmp.ne.s32.totalorder %v54_v1, 0  ;;  %v105_v43 = vand.u32 2, %v391_v3 }
  0x2a   :  { %vm102_vm11 = vcmp.ne.s32.totalorder %v86_v37, 0  ;;  %277 = vst [vmem:[#allocation5 + $0x60] sm:$0xff] %v213_v42  ;;  %v55_v46 = vand.u32 8, %v519_v40  ;;  %v87_v47 = vand.u32 4, %v519_v40  ;;  %v137_v50 = vand.u32 1, %v391_v3 }
  0x2b   :  { %v182_v44 = vsel %vm102_vm11, -0.31622776, %v366_v21  ;;  %v198_v45 = vsel %vm102_vm11, 0.9486833, %v367_v23  ;;  %v56_v2 = vand.u32 8, %v522_v41  ;;  %v88_v6 = vand.u32 4, %v522_v41 }
  0x2c   :  { %v214_v48 = vsel %vm70_vm10, %v198_v45, %v182_v44  ;;  %vm531_vm12 = vcmp.ne.s32.totalorder %v105_v43, 0  ;;  %vm71_vm13 = vcmp.ne.s32.totalorder %v55_v46, 0  ;;  %vm103_vm14 = vcmp.ne.s32.totalorder %v87_v47, 0 }
  0x2d   :  { %278 = vst [vmem:[#allocation5 + $0x68] sm:$0xff] %v214_v48  ;;  %v106_v51 = vand.u32 2, %v394_v4  ;;  %v183_v52 = vsel %vm103_vm14, -0.31622776, %v366_v21  ;;  %v199_v55 = vsel %vm103_vm14, 0.9486833, %v367_v23 }
  0x2e   :  { %vm72_vm15 = vcmp.ne.s32.totalorder %v56_v2, 0  ;;  %vm104_vm0 = vcmp.ne.s32.totalorder %v88_v6, 0  ;;  %v215_v57 = vsel %vm71_vm13, %v199_v55, %v183_v52  ;;  %vm153_vm1 = vcmp.ne.s32.totalorder %v137_v50, 0 }
  0x2f   :  { %v184_v58 = vsel %vm104_vm0, -0.31622776, %v366_v21  ;;  %v200_v59 = vsel %vm104_vm0, 0.9486833, %v367_v23  ;;  %279 = vst [vmem:[#allocation5 + $0x70] sm:$0xff] %v215_v57  ;;  %vm543_vm2 = vcmp.ne.s32.totalorder %v106_v51, 0 }
  0x30   :  { %v216_v61 = vsel %vm72_vm15, %v200_v59, %v184_v58  ;;  %v217_v62 = vsel %vm153_vm1, -0.31622776, %v366_v21  ;;  %v233_v3 = vsel %vm153_vm1, 0.9486833, %v367_v23  ;;  %v138_v13 = vand.u32 1, %v394_v4 }
  0x31   :  { %280 = vst [vmem:[#allocation5 + $0x78] sm:$0xff] %v216_v61  ;;  %v249_v12 = vsel %vm531_vm12, %v233_v3, %v217_v62  ;;  %v107_v14 = vand.u32 2, %v397_v5  ;;  %v139_v0 = vand.u32 1, %v397_v5  ;;  %v108_v15 = vand.u32 2, %v405_v8 }
  0x32   :  { %282 = vst [vmem:[#allocation5 + $0x80] sm:$0xff] %v249_v12  ;;  %v140_v16 = vand.u32 1, %v405_v8  ;;  %v109_v17 = vand.u32 2, %v402_v7  ;;  %v141_v18 = vand.u32 1, %v402_v7  ;;  %vm154_vm3 = vcmp.ne.s32.totalorder %v138_v13, 0 }
  0x33   :  { %vm123_vm4 = vcmp.ne.s32.totalorder %v107_v14, 0  ;;  %vm155_vm5 = vcmp.ne.s32.totalorder %v139_v0, 0  ;;  %v110_v19 = vand.u32 2, %v408_v9  ;;  %v218_v4 = vsel %vm154_vm3, -0.31622776, %v366_v21 }
  0x34   :  { %v234_v20 = vsel %vm154_vm3, 0.9486833, %v367_v23  ;;  %v219_v5 = vsel %vm155_vm5, -0.31622776, %v366_v21  ;;  %v235_v8 = vsel %vm155_vm5, 0.9486833, %v367_v23 }
  0x35   :  { %v250_v22 = vsel %vm543_vm2, %v234_v20, %v218_v4  ;;  %vm124_vm6 = vcmp.ne.s32.totalorder %v108_v15, 0  ;;  %vm156_vm7 = vcmp.ne.s32.totalorder %v140_v16, 0  ;;  %v251_v7 = vsel %vm123_vm4, %v235_v8, %v219_v5 }
  0x36   :  { %283 = vst [vmem:[#allocation5 + $0x88] sm:$0xff] %v250_v22  ;;  %v220_v24 = vsel %vm156_vm7, -0.31622776, %v366_v21  ;;  %v236_v25 = vsel %vm156_vm7, 0.9486833, %v367_v23  ;;  %vm125_vm8 = vcmp.ne.s32.totalorder %v109_v17, 0 }
  0x37   :  { %284 = vst [vmem:[#allocation5 + $0x90] sm:$0xff] %v251_v7  ;;  %v252_v27 = vsel %vm124_vm6, %v236_v25, %v220_v24  ;;  %vm157_vm9 = vcmp.ne.s32.totalorder %v141_v18, 0  ;;  %vm565_vm10 = vcmp.ne.s32.totalorder %v110_v19, 0  ;;  %v142_v29 = vand.u32 1, %v408_v9 }
  0x38   :  { %285 = vst [vmem:[#allocation5 + $0x98] sm:$0xff] %v252_v27  ;;  %v221_v31 = vsel %vm157_vm9, -0.31622776, %v366_v21  ;;  %v237_v32 = vsel %vm157_vm9, 0.9486833, %v367_v23  ;;  %v111_v33 = vand.u32 2, %v411_v10 }
  0x39   :  { %v143_v34 = vand.u32 1, %v411_v10  ;;  %v253_v35 = vsel %vm125_vm8, %v237_v32, %v221_v31  ;;  %vm158_vm11 = vcmp.ne.s32.totalorder %v142_v29, 0  ;;  %v112_v36 = vand.u32 2, %v414_v11 }
  0x3a   :  { %v144_v1 = vand.u32 1, %v414_v11  ;;  %286 = vst [vmem:[#allocation5 + $0xa0] sm:$0xff] %v253_v35  ;;  %v222_v37 = vsel %vm158_vm11, -0.31622776, %v366_v21  ;;  %v238_v9 = vsel %vm158_vm11, 0.9486833, %v367_v23 }
  0x3b   :  { %vm127_vm12 = vcmp.ne.s32.totalorder %v111_v33, 0  ;;  %vm159_vm13 = vcmp.ne.s32.totalorder %v143_v34, 0  ;;  %v254_v38 = vsel %vm565_vm10, %v238_v9, %v222_v37  ;;  %vm128_vm14 = vcmp.ne.s32.totalorder %v112_v36, 0 }
  0x3c   :  { %v223_v39 = vsel %vm159_vm13, -0.31622776, %v366_v21  ;;  %v239_v10 = vsel %vm159_vm13, 0.9486833, %v367_v23  ;;  %287 = vst [vmem:[#allocation5 + $0xa8] sm:$0xff] %v254_v38  ;;  %vm160_vm15 = vcmp.ne.s32.totalorder %v144_v1, 0 }
  0x3d   :  { %v255_v42 = vsel %vm127_vm12, %v239_v10, %v223_v39  ;;  %v113_v11 = vand.u32 2, %v432_v26  ;;  %v145_v43 = vand.u32 1, %v432_v26  ;;  %v224_v44 = vsel %vm160_vm15, -0.31622776, %v366_v21 }
  0x3e   :  { %288 = vst [vmem:[#allocation5 + $0xb0] sm:$0xff] %v255_v42  ;;  %v240_v45 = vsel %vm160_vm15, 0.9486833, %v367_v23  ;;  %v114_v46 = vand.u32 2, %v460_v53  ;;  %v146_v47 = vand.u32 1, %v460_v53  ;;  %v115_v2 = vand.u32 2, %v463_v54 }
  0x3f   :  { %v256_v48 = vsel %vm128_vm14, %v240_v45, %v224_v44  ;;  %vm129_vm0 = vcmp.ne.s32.totalorder %v113_v11, 0  ;;  %vm161_vm1 = vcmp.ne.s32.totalorder %v145_v43, 0  ;;  %v147_v55 = vand.u32 1, %v463_v54 }
  0x40   :  { %289 = vst [vmem:[#allocation5 + $0xb8] sm:$0xff] %v256_v48  ;;  %v225_v6 = vsel %vm161_vm1, -0.31622776, %v366_v21  ;;  %v241_v49 = vsel %vm161_vm1, 0.9486833, %v367_v23  ;;  %vm130_vm2 = vcmp.ne.s32.totalorder %v114_v46, 0 }
  0x41   :  { %vm162_vm3 = vcmp.ne.s32.totalorder %v146_v47, 0  ;;  %v257_v26 = vsel %vm129_vm0, %v241_v49, %v225_v6  ;;  %vm593_vm4 = vcmp.ne.s32.totalorder %v115_v2, 0  ;;  %v116_v57 = vand.u32 2, %v470_v56 }
  0x42   :  { %v226_v50 = vsel %vm162_vm3, -0.31622776, %v366_v21  ;;  %v242_v51 = vsel %vm162_vm3, 0.9486833, %v367_v23  ;;  %290 = vst [vmem:[#allocation5 + $0xc0] sm:$0xff] %v257_v26  ;;  %v148_v58 = vand.u32 1, %v470_v56 }
  0x43   :  { %v258_v53 = vsel %vm130_vm2, %v242_v51, %v226_v50  ;;  %v117_v59 = vand.u32 2, %v476_v60  ;;  %v149_v61 = vand.u32 1, %v476_v60  ;;  %v118_v62 = vand.u32 2, %v505_v30 }
  0x44   :  { %291 = vst [vmem:[#allocation5 + $0xc8] sm:$0xff] %v258_v53  ;;  %v150_v3 = vand.u32 1, %v505_v30  ;;  %vm163_vm5 = vcmp.ne.s32.totalorder %v147_v55, 0  ;;  %vm132_vm6 = vcmp.ne.s32.totalorder %v116_v57, 0  ;;  %vm164_vm7 = vcmp.ne.s32.totalorder %v148_v58, 0 }
  0x45   :  { %v119_v63 = vand.u32 2, %v519_v40  ;;  %v227_v54 = vsel %vm163_vm5, -0.31622776, %v366_v21  ;;  %v243_v12 = vsel %vm163_vm5, 0.9486833, %v367_v23  ;;  %vm133_vm8 = vcmp.ne.s32.totalorder %v117_v59, 0 }
  0x46   :  { %v228_v56 = vsel %vm164_vm7, -0.31622776, %v366_v21  ;;  %v259_v13 = vsel %vm593_vm4, %v243_v12, %v227_v54  ;;  %v244_v60 = vsel %vm164_vm7, 0.9486833, %v367_v23  ;;  %vm165_vm9 = vcmp.ne.s32.totalorder %v149_v61, 0 }
  0x47   :  { %292 = vst [vmem:[#allocation5 + $0xd0] sm:$0xff] %v259_v13  ;;  %v260_v30 = vsel %vm132_vm6, %v244_v60, %v228_v56  ;;  %v229_v14 = vsel %vm165_vm9, -0.31622776, %v366_v21  ;;  %v245_v0 = vsel %vm165_vm9, 0.9486833, %v367_v23  ;;  %vm134_vm10 = vcmp.ne.s32.totalorder %v118_v62, 0 }
  0x48   :  { %293 = vst [vmem:[#allocation5 + $0xd8] sm:$0xff] %v260_v30  ;;  %v261_v15 = vsel %vm133_vm8, %v245_v0, %v229_v14  ;;  %vm166_vm11 = vcmp.ne.s32.totalorder %v150_v3, 0  ;;  %vm613_vm12 = vcmp.ne.s32.totalorder %v119_v63, 0  ;;  %v151_v17 = vand.u32 1, %v519_v40 }
  0x49   :  { %294 = vst [vmem:[#allocation5 + $0xe0] sm:$0xff] %v261_v15  ;;  %v230_v18 = vsel %vm166_vm11, -0.31622776, %v366_v21  ;;  %v246_v19 = vsel %vm166_vm11, 0.9486833, %v367_v23  ;;  %v120_v4 = vand.u32 2, %v522_v41 }
  0x4a   :  { %v152_v20 = vand.u32 1, %v522_v41  ;;  %v262_v5 = vsel %vm134_vm10, %v246_v19, %v230_v18  ;;  %vm167_vm13 = vcmp.ne.s32.totalorder %v151_v17, 0 }
  0x4b   :  { %295 = vst [vmem:[#allocation5 + $0xe8] sm:$0xff] %v262_v5  ;;  %v231_v22 = vsel %vm167_vm13, -0.31622776, %v366_v21  ;;  %v247_v8 = vsel %vm167_vm13, 0.9486833, %v367_v23  ;;  %vm136_vm14 = vcmp.ne.s32.totalorder %v120_v4, 0 }
  0x4c   :  { %vm168_vm15 = vcmp.ne.s32.totalorder %v152_v20, 0  ;;  %v263_v40 = vsel %vm613_vm12, %v247_v8, %v231_v22 }
  0x4d   :  { %v232_v7 = vsel %vm168_vm15, -0.31622776, %v366_v21  ;;  %v248_v24 = vsel %vm168_vm15, 0.9486833, %v367_v23  ;;  %296 = vst [vmem:[#allocation5 + $0xf0] sm:$0xff] %v263_v40 }
  0x4e   :  { %v264_v25 = vsel %vm136_vm14, %v248_v24, %v232_v7 }
  0x4f   :  { %297 = vst [vmem:[#allocation5 + $0xf8] sm:$0xff] %v264_v25 }
  0x50   :  { %352 = shalt.err (!%p349_p9)
}
  0x51   :  { %s369_s13 = smov 512   ;;  %s370_s14 = smov 32  }
  0x52   :  { %309 = dma.vmem_to_hbm [thread:$0]  %s304_s11, 4096, %s632_s1, [#allocation4], %s369_s13, %s369_s13, %s370_s14  }
  0x53   :  { %363 = dma.done.wait [#allocation4], 4096  }
  0x54   :  { %364 = vsyncadd [#allocation4], 4294963200 }
  0x55   :  { %313 = vsyncpa [#allocation3], 1 }
  0x56   :  { %314 = vsyncpa [#allocation4], 1 }

</bundles_post_ra>
